<compile_context>
chip_gen: v5e
topology: v5e:2x2
jax: 0.10.0
libtpu: 0.0.40
codegen_flags: <defaults>
</compile_context>

<pallas_src>
import functools

import jax
import jax.numpy as jnp
from jax import lax
from jax.experimental import pallas as pl
from jax.experimental.pallas import tpu as pltpu

LN_EPS = 1e-5
LANE = 128
SUBLANE = 8


def _round_up(x, m):
    return (x + m - 1) // m * m


def dummy_cell_kernel(x_ref, w_ref, p_ref, o_ref, *, hidden_size, needs_mask):
    # Linear on the MXU; f32 accumulate regardless of input dtype (bf16-friendly).
    nx = jnp.dot(x_ref[...], w_ref[...], preferred_element_type=jnp.float32)

    params = p_ref[...].astype(jnp.float32)          # (3, H_pad): bias, gamma, beta
    bias, gamma, beta = params[0:1], params[1:2], params[2:3]
    nx = nx + bias                                   # padded bias columns are 0

    inv_h = jnp.float32(1.0 / hidden_size)
    if needs_mask:
        # Hidden dim was padded up to a lane multiple; only the first
        # `hidden_size` columns participate in the LayerNorm statistics.
        col = lax.broadcasted_iota(jnp.int32, nx.shape, 1)
        valid = col < hidden_size
        nx_valid = jnp.where(valid, nx, 0.0)
    else:
        nx_valid = nx

    mean = jnp.sum(nx_valid, axis=-1, keepdims=True) * inv_h
    centered = nx - mean
    if needs_mask:
        centered = jnp.where(valid, centered, 0.0)   # padded cols -> 0 -> tanh(0)=0
    var = jnp.sum(centered * centered, axis=-1, keepdims=True) * inv_h

    y = centered * lax.rsqrt(var + LN_EPS) * gamma + beta
    o_ref[...] = jnp.tanh(y).astype(o_ref.dtype)     # lane-dense (H_pad wide) store


@functools.partial(jax.jit, static_argnames=("block_m",))
def base_dummy_cell(inputs, hidden_state, w_ih_t, b_ih, ln_gamma, ln_beta,
                    *, block_m=256):
    """Forward pass of BaseDummyCell. hidden_state is unused (dummy cell)."""
    del hidden_state  # not used, matching the PyTorch module semantics
    B, K = inputs.shape
    H = w_ih_t.shape[1]

    H_pad = _round_up(H, LANE)                       # lane-dense output width
    TM = min(block_m, _round_up(B, SUBLANE))         # batch tile (sublane-aligned)
    B_pad = _round_up(B, TM)

    x = inputs
    if B_pad != B:
        x = jnp.pad(x, ((0, B_pad - B), (0, 0)))

    # Fuse the three per-feature parameter rows into a single (3, H_pad) DMA.
    params = jnp.stack(
        [b_ih.reshape(-1), ln_gamma.reshape(-1), ln_beta.reshape(-1)], axis=0)
    w = w_ih_t
    if H_pad != H:
        w = jnp.pad(w, ((0, 0), (0, H_pad - H)))
        params = jnp.pad(params, ((0, 0), (0, H_pad - H)))

    kernel = functools.partial(
        dummy_cell_kernel, hidden_size=H, needs_mask=(H_pad != H))

    out = pl.pallas_call(
        kernel,
        out_shape=jax.ShapeDtypeStruct((B_pad, H_pad), inputs.dtype),
        grid_spec=pl.GridSpec(
            grid=(B_pad // TM,),
            in_specs=[
                pl.BlockSpec((TM, K), lambda i: (i, 0)),      # batch-tiled activations
                pl.BlockSpec((K, H_pad), lambda i: (0, 0)),   # weight resident in VMEM
                pl.BlockSpec((3, H_pad), lambda i: (0, 0)),   # fused bias/gamma/beta
            ],
            out_specs=pl.BlockSpec((TM, H_pad), lambda i: (i, 0)),
        ),
        compiler_params=pltpu.CompilerParams(
            dimension_semantics=("parallel",)),               # megacore on v7x
    )(x, w, params)

    out = out[:B, :H]
    return out, out  # (hidden_state, hidden_state)


def reference(inputs, w_ih_t, b_ih, ln_gamma, ln_beta):
    nx = inputs.astype(jnp.float32) @ w_ih_t.astype(jnp.float32) + b_ih
    mean = jnp.mean(nx, axis=-1, keepdims=True)
    var = jnp.mean((nx - mean) ** 2, axis=-1, keepdims=True)
    nx = (nx - mean) / jnp.sqrt(var + LN_EPS) * ln_gamma + ln_beta
    return jnp.tanh(nx)


if __name__ == "__main__":
    input_size, hidden_size = 32, 32
    key = jax.random.PRNGKey(0)
    k_x, k_h, k_w, k_b, k_x2 = jax.random.split(key, 5)

    # Deterministic params (PyTorch Linear init: U(-1/sqrt(in), 1/sqrt(in)));
    # weight stored as [input_size, hidden_size] == W_ih^T.
    bound = 1.0 / (input_size ** 0.5)
    w_ih_t = jax.random.uniform(k_w, (input_size, hidden_size),
                                minval=-bound, maxval=bound, dtype=jnp.float32)
    b_ih = jax.random.uniform(k_b, (1, hidden_size),
                              minval=-bound, maxval=bound, dtype=jnp.float32)
    ln_gamma = jnp.ones((1, hidden_size), jnp.float32)   # torch LayerNorm defaults
    ln_beta = jnp.zeros((1, hidden_size), jnp.float32)

    # --- small f32 case (batch=8) ---
    batch = 8
    x = jax.random.normal(k_x, (batch, input_size), jnp.float32)
    h0 = jax.random.normal(k_h, (batch, hidden_size), jnp.float32)
    h, h2 = base_dummy_cell(x, h0, w_ih_t, b_ih, ln_gamma, ln_beta)
    jax.block_until_ready(h)
    ref = reference(x, w_ih_t, b_ih, ln_gamma, ln_beta)
    assert h.shape == (batch, hidden_size)
    assert jnp.allclose(h, ref, atol=1e-5, rtol=1e-5)
    assert jnp.array_equal(h, h2)

    # --- multi-tile grid (batch not a multiple of the tile; padding path) ---
    batch2 = 40
    x2 = jax.random.normal(k_x2, (batch2, input_size), jnp.float32)
    h0b = jnp.zeros((batch2, hidden_size), jnp.float32)
    hb, _ = base_dummy_cell(x2, h0b, w_ih_t, b_ih, ln_gamma, ln_beta, block_m=16)
    jax.block_until_ready(hb)
    refb = reference(x2, w_ih_t, b_ih, ln_gamma, ln_beta)
    assert hb.shape == (batch2, hidden_size)
    assert jnp.allclose(hb, refb, atol=1e-5, rtol=1e-5)

    # --- bf16 activations/weights (native MXU bf16 path, f32 LN/tanh) ---
    xbf = x.astype(jnp.bfloat16)
    wbf = w_ih_t.astype(jnp.bfloat16)
    hbf, _ = base_dummy_cell(xbf, h0, wbf, b_ih, ln_gamma, ln_beta)
    jax.block_until_ready(hbf)
    ref_bf = reference(xbf, wbf, b_ih, ln_gamma, ln_beta)
    assert jnp.allclose(hbf.astype(jnp.float32), ref_bf, atol=5e-2, rtol=5e-2)

    print("KERNEL_OK")
</pallas_src>

<mosaic_0001>
module attributes {stable_mosaic.version = 11 : i64} {
  func.func @dummy_cell_kernel(%arg0: i32, %arg1: memref<8x32xf32, #tpu.memory_space<vmem>>, %arg2: memref<32x128xf32, #tpu.memory_space<vmem>>, %arg3: memref<3x128xf32, #tpu.memory_space<vmem>>, %arg4: memref<8x128xf32, #tpu.memory_space<vmem>>) attributes {dimension_semantics = [#tpu.dimension_semantics<parallel>], iteration_bounds = array<i64: 1>, scalar_prefetch = 0 : i64, scratch_operands = 0 : i64, tpu.core_type = #tpu.core_type<tc>, window_params = [{transform_indices = @transform_0, window_bounds = array<i64: 8, 32>}, {pipeline_mode = #tpu.pipeline_mode<synchronous>, transform_indices = @transform_1, window_bounds = array<i64: 32, 128>}, {pipeline_mode = #tpu.pipeline_mode<synchronous>, transform_indices = @transform_2, window_bounds = array<i64: 3, 128>}, {transform_indices = @transform_3, window_bounds = array<i64: 8, 128>}]} {
    %c0 = arith.constant 0 : index
    %c0_0 = arith.constant 0 : index
    %0 = vector.load %arg1[%c0, %c0_0] : memref<8x32xf32, #tpu.memory_space<vmem>>, vector<8x32xf32>
    %c0_1 = arith.constant 0 : index
    %c0_2 = arith.constant 0 : index
    %1 = vector.load %arg2[%c0_1, %c0_2] : memref<32x128xf32, #tpu.memory_space<vmem>>, vector<32x128xf32>
    %cst = arith.constant dense<0.000000e+00> : vector<8x128xf32>
    %2 = tpu.matmul %0, %1, %cst {dimension_numbers = #tpu.dot_dimension_numbers<[1], [0], [0], [1], [0, 0, 1, 1], [], []>} : vector<8x32xf32>, vector<32x128xf32>, vector<8x128xf32> -> vector<8x128xf32>
    %c0_3 = arith.constant 0 : index
    %c0_4 = arith.constant 0 : index
    %3 = vector.load %arg3[%c0_3, %c0_4] : memref<3x128xf32, #tpu.memory_space<vmem>>, vector<3x128xf32>
    %4 = vector.extract_strided_slice %3 {offsets = [0, 0], sizes = [1, 128], strides = [1, 1]} : vector<3x128xf32> to vector<1x128xf32>
    %5 = vector.extract_strided_slice %3 {offsets = [1, 0], sizes = [1, 128], strides = [1, 1]} : vector<3x128xf32> to vector<1x128xf32>
    %6 = vector.extract_strided_slice %3 {offsets = [2, 0], sizes = [1, 128], strides = [1, 1]} : vector<3x128xf32> to vector<1x128xf32>
    %7 = vector.broadcast %4 : vector<1x128xf32> to vector<8x128xf32>
    %8 = arith.addf %2, %7 : vector<8x128xf32>
    %9 = tpu.iota {dimensions = array<i32: 1>} : vector<8x128xi32>
    %c32_i32 = arith.constant 32 : i32
    %10 = vector.broadcast %c32_i32 : i32 to vector<8x128xi32>
    %11 = arith.cmpi slt, %9, %10 : vector<8x128xi32>
    %cst_5 = arith.constant 0.000000e+00 : f32
    %12 = vector.broadcast %cst_5 : f32 to vector<8x128xf32>
    %13 = arith.select %11, %8, %12 : vector<8x128xi1>, vector<8x128xf32>
    %cst_6 = arith.constant dense<0.000000e+00> : vector<8xf32>
    %14 = vector.multi_reduction <add>, %13, %cst_6 [1] : vector<8x128xf32> to vector<8xf32>
    %15 = vector.shape_cast %14 : vector<8xf32> to vector<8x1xf32>
    %cst_7 = arith.constant 3.125000e-02 : f32
    %16 = vector.broadcast %cst_7 : f32 to vector<8x1xf32>
    %17 = arith.mulf %15, %16 : vector<8x1xf32>
    %18 = vector.broadcast %17 : vector<8x1xf32> to vector<8x128xf32>
    %19 = arith.subf %8, %18 : vector<8x128xf32>
    %cst_8 = arith.constant 0.000000e+00 : f32
    %20 = vector.broadcast %cst_8 : f32 to vector<8x128xf32>
    %21 = arith.select %11, %19, %20 : vector<8x128xi1>, vector<8x128xf32>
    %22 = arith.mulf %21, %21 : vector<8x128xf32>
    %cst_9 = arith.constant dense<0.000000e+00> : vector<8xf32>
    %23 = vector.multi_reduction <add>, %22, %cst_9 [1] : vector<8x128xf32> to vector<8xf32>
    %24 = vector.shape_cast %23 : vector<8xf32> to vector<8x1xf32>
    %cst_10 = arith.constant 3.125000e-02 : f32
    %25 = vector.broadcast %cst_10 : f32 to vector<8x1xf32>
    %26 = arith.mulf %24, %25 : vector<8x1xf32>
    %cst_11 = arith.constant 9.99999974E-6 : f32
    %27 = vector.broadcast %cst_11 : f32 to vector<8x1xf32>
    %28 = arith.addf %26, %27 : vector<8x1xf32>
    %29 = math.rsqrt %28 : vector<8x1xf32>
    %30 = vector.broadcast %29 : vector<8x1xf32> to vector<8x128xf32>
    %31 = arith.mulf %21, %30 : vector<8x128xf32>
    %32 = vector.broadcast %5 : vector<1x128xf32> to vector<8x128xf32>
    %33 = arith.mulf %31, %32 : vector<8x128xf32>
    %34 = vector.broadcast %6 : vector<1x128xf32> to vector<8x128xf32>
    %35 = arith.addf %33, %34 : vector<8x128xf32>
    %36 = math.tanh %35 : vector<8x128xf32>
    %c0_12 = arith.constant 0 : index
    %c0_13 = arith.constant 0 : index
    %37 = vector.load %arg4[%c0_12, %c0_13] : memref<8x128xf32, #tpu.memory_space<vmem>>, vector<8x128xf32>
    tpu.vector_store %arg4[%c0_12, %c0_13], %36 {strides = array<i32>} : memref<8x128xf32, #tpu.memory_space<vmem>>, vector<8x128xf32>,
    return
  }
  func.func @transform_0(%arg0: i32) -> (i32, i32) {
    %c0_i32 = arith.constant 0 : i32
    %c0_i32_0 = arith.constant 0 : i32
    return %arg0, %c0_i32 : i32, i32
  }
  func.func @transform_1(%arg0: i32) -> (i32, i32) {
    %c0_i32 = arith.constant 0 : i32
    %c0_i32_0 = arith.constant 0 : i32
    %c0_i32_1 = arith.constant 0 : i32
    return %c0_i32, %c0_i32_0 : i32, i32
  }
  func.func @transform_2(%arg0: i32) -> (i32, i32) {
    %c0_i32 = arith.constant 0 : i32
    %c0_i32_0 = arith.constant 0 : i32
    %c0_i32_1 = arith.constant 0 : i32
    return %c0_i32, %c0_i32_0 : i32, i32
  }
  func.func @transform_3(%arg0: i32) -> (i32, i32) {
    %c0_i32 = arith.constant 0 : i32
    %c0_i32_0 = arith.constant 0 : i32
    return %arg0, %c0_i32 : i32, i32
  }
}

</mosaic_0001>

<bundles_post_ra>
// kernel: base_dummy_cell.1
= control target key start
LH: loop header
LB: loop body
LE: loop exit
PB: predicated region body
PF: predicated region fallthrough
CT: control target
= control target key end

     0   :  { %vm21_vm0 = vcmask 261120   ;;  %v45_v5 = vlaneseq  ;;  %s126_s1 = inlined_call_operand.vmem [shape: f32[32,128], index: 1, kind: input, shape index: {}]   ;;  %s127_s0 = inlined_call_operand.vmem [shape: f32[8,32], index: 0, kind: input, shape index: {}]   ;;  %s128_s2 = inlined_call_operand.vmem [shape: f32[3,128], index: 2, kind: input, shape index: {}]   ;;  %s129_s3 = inlined_call_operand.vmem [shape: f32[8,128], index: 3, kind: output, shape index: {}]  }
   0x1   :  { %v18_v0 = vld [vmem:[%s126_s1 + $0x18] sm:$0xff]  ;;  %v17_v1 = vld [vmem:[%s126_s1 + $0x10] sm:$0xff]  ;;  %v16_v2 = vld [vmem:[%s126_s1 + $0x8] sm:$0xff] }
   0x2   :  { %37 = vmatpush.msra.mxu0 %v18_v0  ;;  %v15_v3 = vld [vmem:[%s126_s1] sm:$0xff]  ;;  %v46_v7 = vand.u32 127, %v45_v5 }
   0x3   :  { %v14_v4 = vld [vmem:[%s127_s0] sm:$0xff] }
   0x4   :  { %38 = vmatpush.msra.mxu0 %v17_v1  ;;  %v19_v6 = vld [vmem:[%s128_s2] sm:$0x7]  ;;  %vm47_vm1 = vcmp.lt.s32.totalorder %v46_v7, 32 }
   0x5   :  { %v20_v8 = vperm.slane %v19_v6, 0  ;;  %v70_v26 = vperm.slane %v19_v6, 1  ;;  %v72_v28 = vperm.slane %v19_v6, 2 }
   0x6   :  { %39 = vmatpush.msra.mxu0 %v16_v2 }
   0x8   :  { %40 = vmatpush.msra.mxu0 %v15_v3 }
   0x9   :  { %80 = vmatmul.msk.f32.vlgmr.msra.gmra.mxu0 %vm21_vm0, %v14_v4 }
  0x86   :  { %v42_v9 = vpop.f32.mrf.mxu0 }
  0x87   :  { %v43_v10 = vadd.f32 %v42_v9, %v20_v8 }
  0x89   :  { %v48_v11 = vsel %vm47_vm1, %v43_v10, 0.0 }
  0x8a   :  { %49 = vadd.xlane.f32.xlu0 %v48_v11 }
  0xfd   :  { %v50_v12 = vpop.xlane.xlu0 %49 }
  0xfe   :  { %v51_v13 = vmul.f32 0.03125, %v50_v12 }
 0x100   :  { %v52_v14 = vsub.f32 %v43_v10, %v51_v13 }
 0x102   :  { %v53_v15 = vsel %vm47_vm1, %v52_v14, 0.0 }
 0x103   :  { %v54_v16 = vmul.f32 %v53_v15, %v53_v15 }
 0x105   :  { %55 = vadd.xlane.f32.xlu0 %v54_v16 }
 0x178   :  { %v56_v17 = vpop.xlane.xlu0 %55 }
 0x179   :  { %v57_v18 = vmul.f32 0.03125, %v56_v17 }
 0x17b   :  { %v58_v19 = vadd.f32 1e-05, %v57_v18 }
 0x17d   :  { %81 = vrsqrt.f32 %v58_v19  ;;  %vm65_vm3 = vweird.f32 %v58_v19 }
 0x183   :  { %v82_v20 = vpop.eup %81 }
 0x184   :  { %v60_v21 = vmul.f32 %v82_v20, %v58_v19  ;;  %vm66_vm2 = vweird.f32 %v82_v20 }
 0x185   :  { %vm67_vm4 = vmor %vm65_vm3, %vm66_vm2 }
 0x186   :  { %v61_v22 = vmul.f32 %v82_v20, %v60_v21 }
 0x188   :  { %v62_v23 = vmul.f32 0.5, %v61_v22 }
 0x18a   :  { %v63_v24 = vsub.f32 1.5, %v62_v23 }
 0x18c   :  { %v64_v25 = vmul.f32 %v82_v20, %v63_v24 }
 0x18e   :  { %v68_v27 = vsel %vm67_vm4, %v82_v20, %v64_v25 }
 0x18f   :  { %v69_v29 = vmul.f32 %v68_v27, %v53_v15 }
 0x191   :  { %v71_v30 = vmul.f32 %v70_v26, %v69_v29 }
 0x193   :  { %v73_v31 = vadd.f32 %v72_v28, %v71_v30 }
 0x195   :  { %83 = vtanh.f32 %v73_v31 }
 0x19b   :  { %v84_v32 = vpop.eup %83 }
 0x19c   :  { %75 = vst [vmem:[%s129_s3] sm:$0xff] %v84_v32 }

</bundles_post_ra>
